<compile_context>
chip_gen: v5e
topology: v5e:2x2
jax: 0.10.0
libtpu: 0.0.40
codegen_flags: <defaults>
</compile_context>

<pallas_src>
import jax
import jax.numpy as jnp
from jax.experimental import pallas as pl
from jax.experimental.pallas import tpu as pltpu


def _determ_policy_kernel(obs_ref, w1_ref, b1_ref, w2_ref, b2_ref,
                          w3_ref, b3_ref, scale_ref, offset_ref, out_ref):
    # One (TILE_B, obs_dim) batch tile; all weights VMEM-resident.
    x = obs_ref[...]  # already fp32

    h1 = jnp.dot(x, w1_ref[...], preferred_element_type=jnp.float32) + b1_ref[...]
    h1 = jnp.maximum(h1, 0.0)                       # hidden activation: ReLU

    h2 = jnp.dot(h1, w2_ref[...], preferred_element_type=jnp.float32) + b2_ref[...]
    h2 = jnp.maximum(h2, 0.0)                       # hidden activation: ReLU

    pi = jnp.dot(h2, w3_ref[...], preferred_element_type=jnp.float32) + b3_ref[...]
    # MLP output activation is Identity; apply action-limit squash:
    out_ref[...] = (scale_ref[...] * jnp.tanh(pi) + offset_ref[...]).astype(out_ref.dtype)


def _round_up(x, m):
    return ((x + m - 1) // m) * m


def determ_policy_forward(obs, params, tile_b=512):
    """obs: [B, obs_dim] float32. params: dict of weights/biases/limits.

    Weights are stored pre-transposed as [in, out] so the kernel computes
    y = x @ W + b directly on the MXU.
    """
    B, obs_dim = obs.shape
    h1 = params["w1"].shape[1]
    h2 = params["w2"].shape[1]
    act_dim = params["w3"].shape[1]

    # Batch tile: multiple of 8 (fp32 sublane), capped by the requested tile.
    tile_b = min(tile_b, _round_up(B, 8))
    b_pad = _round_up(B, tile_b)
    if b_pad != B:
        obs = jnp.pad(obs, ((0, b_pad - B), (0, 0)))
    num_tiles = b_pad // tile_b

    # Constant-fold the action-limit affine transform (registered buffers).
    scale = (params["act_high"] - params["act_low"]) * 0.5
    offset = (params["act_high"] + params["act_low"]) * 0.5

    # obs/out tiled over the batch grid; weights/biases/limits resident.
    obs_spec = pl.BlockSpec((tile_b, obs_dim), lambda i: (i, 0))
    out_spec = pl.BlockSpec((tile_b, act_dim), lambda i: (i, 0))

    def _resident(shape):
        return pl.BlockSpec(shape, lambda i: (0, 0))

    in_specs = [
        obs_spec,
        _resident(params["w1"].shape), _resident(params["b1"].shape),
        _resident(params["w2"].shape), _resident(params["b2"].shape),
        _resident(params["w3"].shape), _resident(params["b3"].shape),
        _resident(scale.shape), _resident(offset.shape),
    ]

    flops = 2 * B * (obs_dim * h1 + h1 * h2 + h2 * act_dim)
    param_bytes = sum(
        int(params[k].size) * 4
        for k in ("w1", "b1", "w2", "b2", "w3", "b3")
    ) + int(scale.size + offset.size) * 4
    cost = pl.CostEstimate(
        flops=flops,
        transcendentals=B * act_dim,                      # tanh
        bytes_accessed=B * (obs_dim + act_dim) * 4 + param_bytes,
    )

    out = pl.pallas_call(
        _determ_policy_kernel,
        out_shape=jax.ShapeDtypeStruct((b_pad, act_dim), jnp.float32),
        grid=(num_tiles,),
        in_specs=in_specs,
        out_specs=out_spec,
        compiler_params=pltpu.CompilerParams(
            dimension_semantics=("parallel",)),           # megacore on v7x
        cost_estimate=cost,
    )(obs,
      params["w1"], params["b1"],
      params["w2"], params["b2"],
      params["w3"], params["b3"],
      scale, offset)

    return out[:B]


def init_params(key, obs_dim, hidden_sizes, act_dim):
    """Deterministic PyTorch-like init: U(-1/sqrt(fan_in), 1/sqrt(fan_in)).
    Weights stored as [in, out] (transposed relative to nn.Linear.weight)."""
    sizes = [obs_dim] + list(hidden_sizes) + [act_dim]
    params = {}
    for i in range(len(sizes) - 1):
        fan_in, fan_out = sizes[i], sizes[i + 1]
        key, kw, kb = jax.random.split(key, 3)
        bound = 1.0 / jnp.sqrt(jnp.float32(fan_in))
        params[f"w{i+1}"] = jax.random.uniform(
            kw, (fan_in, fan_out), jnp.float32, -bound, bound)
        # biases kept 2D [1, out] for TPU-friendly broadcasting in the kernel
        params[f"b{i+1}"] = jax.random.uniform(
            kb, (1, fan_out), jnp.float32, -bound, bound)
    # action limits (registered buffers in the torch module), shape [1, act_dim]
    params["act_high"] = jnp.full((1, act_dim), 2.0, jnp.float32)
    params["act_low"] = jnp.full((1, act_dim), -1.0, jnp.float32)
    return params


def reference_forward(obs, params):
    """Pure-JAX reference mirroring the PyTorch forward."""
    h = jnp.maximum(obs @ params["w1"] + params["b1"], 0.0)
    h = jnp.maximum(h @ params["w2"] + params["b2"], 0.0)
    pi = h @ params["w3"] + params["b3"]
    high, low = params["act_high"], params["act_low"]
    return (high - low) * 0.5 * jnp.tanh(pi) + (high + low) * 0.5


if __name__ == "__main__":
    obs_dim, act_dim = 16, 4
    hidden_sizes = (32, 32)
    batch = 8

    key = jax.random.PRNGKey(0)
    key, k_obs = jax.random.split(key)
    obs = jax.random.normal(k_obs, (batch, obs_dim), jnp.float32)

    params = init_params(key, obs_dim, hidden_sizes, act_dim)

    out = determ_policy_forward(obs, params)
    out = jax.block_until_ready(out)

    ref = reference_forward(obs, params)
    assert out.shape == (batch, act_dim)
    assert jnp.allclose(out, ref, atol=1e-5, rtol=1e-5), "mismatch vs reference"

    # Also exercise a batch that needs padding / multiple grid steps.
    key, k_obs2 = jax.random.split(key)
    obs2 = jax.random.normal(k_obs2, (1000, obs_dim), jnp.float32)
    out2 = jax.block_until_ready(determ_policy_forward(obs2, params, tile_b=256))
    ref2 = reference_forward(obs2, params)
    assert out2.shape == (1000, act_dim)
    assert jnp.allclose(out2, ref2, atol=1e-5, rtol=1e-5), "mismatch vs reference (gridded)"

    print("KERNEL_OK")
</pallas_src>

<mosaic_0001>
module attributes {stable_mosaic.version = 11 : i64} {
  func.func @_determ_policy_kernel(%arg0: i32, %arg1: memref<8x16xf32, #tpu.memory_space<vmem>>, %arg2: memref<16x32xf32, #tpu.memory_space<vmem>>, %arg3: memref<1x32xf32, #tpu.memory_space<vmem>>, %arg4: memref<32x32xf32, #tpu.memory_space<vmem>>, %arg5: memref<1x32xf32, #tpu.memory_space<vmem>>, %arg6: memref<32x4xf32, #tpu.memory_space<vmem>>, %arg7: memref<1x4xf32, #tpu.memory_space<vmem>>, %arg8: memref<1x4xf32, #tpu.memory_space<vmem>>, %arg9: memref<1x4xf32, #tpu.memory_space<vmem>>, %arg10: memref<8x4xf32, #tpu.memory_space<vmem>>) attributes {dimension_semantics = [#tpu.dimension_semantics<parallel>], iteration_bounds = array<i64: 1>, scalar_prefetch = 0 : i64, scratch_operands = 0 : i64, tpu.core_type = #tpu.core_type<tc>, window_params = [{transform_indices = @transform_0, window_bounds = array<i64: 8, 16>}, {pipeline_mode = #tpu.pipeline_mode<synchronous>, transform_indices = @transform_1, window_bounds = array<i64: 16, 32>}, {pipeline_mode = #tpu.pipeline_mode<synchronous>, transform_indices = @transform_2, window_bounds = array<i64: 1, 32>}, {pipeline_mode = #tpu.pipeline_mode<synchronous>, transform_indices = @transform_3, window_bounds = array<i64: 32, 32>}, {pipeline_mode = #tpu.pipeline_mode<synchronous>, transform_indices = @transform_4, window_bounds = array<i64: 1, 32>}, {pipeline_mode = #tpu.pipeline_mode<synchronous>, transform_indices = @transform_5, window_bounds = array<i64: 32, 4>}, {pipeline_mode = #tpu.pipeline_mode<synchronous>, transform_indices = @transform_6, window_bounds = array<i64: 1, 4>}, {pipeline_mode = #tpu.pipeline_mode<synchronous>, transform_indices = @transform_7, window_bounds = array<i64: 1, 4>}, {pipeline_mode = #tpu.pipeline_mode<synchronous>, transform_indices = @transform_8, window_bounds = array<i64: 1, 4>}, {transform_indices = @transform_9, window_bounds = array<i64: 8, 4>}]} {
    %c0 = arith.constant 0 : index
    %c0_0 = arith.constant 0 : index
    %0 = vector.load %arg1[%c0, %c0_0] : memref<8x16xf32, #tpu.memory_space<vmem>>, vector<8x16xf32>
    %c0_1 = arith.constant 0 : index
    %c0_2 = arith.constant 0 : index
    %1 = vector.load %arg2[%c0_1, %c0_2] : memref<16x32xf32, #tpu.memory_space<vmem>>, vector<16x32xf32>
    %cst = arith.constant dense<0.000000e+00> : vector<8x32xf32>
    %2 = tpu.matmul %0, %1, %cst {dimension_numbers = #tpu.dot_dimension_numbers<[1], [0], [0], [1], [0, 0, 1, 1], [], []>} : vector<8x16xf32>, vector<16x32xf32>, vector<8x32xf32> -> vector<8x32xf32>
    %c0_3 = arith.constant 0 : index
    %c0_4 = arith.constant 0 : index
    %3 = vector.load %arg3[%c0_3, %c0_4] : memref<1x32xf32, #tpu.memory_space<vmem>>, vector<1x32xf32>
    %4 = vector.broadcast %3 : vector<1x32xf32> to vector<8x32xf32>
    %5 = arith.addf %2, %4 : vector<8x32xf32>
    %cst_5 = arith.constant 0.000000e+00 : f32
    %6 = vector.broadcast %cst_5 : f32 to vector<8x32xf32>
    %7 = arith.maximumf %5, %6 : vector<8x32xf32>
    %c0_6 = arith.constant 0 : index
    %c0_7 = arith.constant 0 : index
    %8 = vector.load %arg4[%c0_6, %c0_7] : memref<32x32xf32, #tpu.memory_space<vmem>>, vector<32x32xf32>
    %cst_8 = arith.constant dense<0.000000e+00> : vector<8x32xf32>
    %9 = tpu.matmul %7, %8, %cst_8 {dimension_numbers = #tpu.dot_dimension_numbers<[1], [0], [0], [1], [0, 0, 1, 1], [], []>} : vector<8x32xf32>, vector<32x32xf32>, vector<8x32xf32> -> vector<8x32xf32>
    %c0_9 = arith.constant 0 : index
    %c0_10 = arith.constant 0 : index
    %10 = vector.load %arg5[%c0_9, %c0_10] : memref<1x32xf32, #tpu.memory_space<vmem>>, vector<1x32xf32>
    %11 = vector.broadcast %10 : vector<1x32xf32> to vector<8x32xf32>
    %12 = arith.addf %9, %11 : vector<8x32xf32>
    %cst_11 = arith.constant 0.000000e+00 : f32
    %13 = vector.broadcast %cst_11 : f32 to vector<8x32xf32>
    %14 = arith.maximumf %12, %13 : vector<8x32xf32>
    %c0_12 = arith.constant 0 : index
    %c0_13 = arith.constant 0 : index
    %15 = vector.load %arg6[%c0_12, %c0_13] : memref<32x4xf32, #tpu.memory_space<vmem>>, vector<32x4xf32>
    %cst_14 = arith.constant dense<0.000000e+00> : vector<8x4xf32>
    %16 = tpu.matmul %14, %15, %cst_14 {dimension_numbers = #tpu.dot_dimension_numbers<[1], [0], [0], [1], [0, 0, 1, 1], [], []>} : vector<8x32xf32>, vector<32x4xf32>, vector<8x4xf32> -> vector<8x4xf32>
    %c0_15 = arith.constant 0 : index
    %c0_16 = arith.constant 0 : index
    %17 = vector.load %arg7[%c0_15, %c0_16] : memref<1x4xf32, #tpu.memory_space<vmem>>, vector<1x4xf32>
    %18 = vector.broadcast %17 : vector<1x4xf32> to vector<8x4xf32>
    %19 = arith.addf %16, %18 : vector<8x4xf32>
    %c0_17 = arith.constant 0 : index
    %c0_18 = arith.constant 0 : index
    %20 = vector.load %arg8[%c0_17, %c0_18] : memref<1x4xf32, #tpu.memory_space<vmem>>, vector<1x4xf32>
    %21 = math.tanh %19 : vector<8x4xf32>
    %22 = vector.broadcast %20 : vector<1x4xf32> to vector<8x4xf32>
    %23 = arith.mulf %22, %21 : vector<8x4xf32>
    %c0_19 = arith.constant 0 : index
    %c0_20 = arith.constant 0 : index
    %24 = vector.load %arg9[%c0_19, %c0_20] : memref<1x4xf32, #tpu.memory_space<vmem>>, vector<1x4xf32>
    %25 = vector.broadcast %24 : vector<1x4xf32> to vector<8x4xf32>
    %26 = arith.addf %23, %25 : vector<8x4xf32>
    %c0_21 = arith.constant 0 : index
    %c0_22 = arith.constant 0 : index
    %27 = vector.load %arg10[%c0_21, %c0_22] : memref<8x4xf32, #tpu.memory_space<vmem>>, vector<8x4xf32>
    tpu.vector_store %arg10[%c0_21, %c0_22], %26 {strides = array<i32>} : memref<8x4xf32, #tpu.memory_space<vmem>>, vector<8x4xf32>,
    return
  }
  func.func @transform_0(%arg0: i32) -> (i32, i32) {
    %c0_i32 = arith.constant 0 : i32
    %c0_i32_0 = arith.constant 0 : i32
    return %arg0, %c0_i32 : i32, i32
  }
  func.func @transform_1(%arg0: i32) -> (i32, i32) {
    %c0_i32 = arith.constant 0 : i32
    %c0_i32_0 = arith.constant 0 : i32
    %c0_i32_1 = arith.constant 0 : i32
    return %c0_i32, %c0_i32_0 : i32, i32
  }
  func.func @transform_2(%arg0: i32) -> (i32, i32) {
    %c0_i32 = arith.constant 0 : i32
    %c0_i32_0 = arith.constant 0 : i32
    %c0_i32_1 = arith.constant 0 : i32
    return %c0_i32, %c0_i32_0 : i32, i32
  }
  func.func @transform_3(%arg0: i32) -> (i32, i32) {
    %c0_i32 = arith.constant 0 : i32
    %c0_i32_0 = arith.constant 0 : i32
    %c0_i32_1 = arith.constant 0 : i32
    return %c0_i32, %c0_i32_0 : i32, i32
  }
  func.func @transform_4(%arg0: i32) -> (i32, i32) {
    %c0_i32 = arith.constant 0 : i32
    %c0_i32_0 = arith.constant 0 : i32
    %c0_i32_1 = arith.constant 0 : i32
    return %c0_i32, %c0_i32_0 : i32, i32
  }
  func.func @transform_5(%arg0: i32) -> (i32, i32) {
    %c0_i32 = arith.constant 0 : i32
    %c0_i32_0 = arith.constant 0 : i32
    %c0_i32_1 = arith.constant 0 : i32
    return %c0_i32, %c0_i32_0 : i32, i32
  }
  func.func @transform_6(%arg0: i32) -> (i32, i32) {
    %c0_i32 = arith.constant 0 : i32
    %c0_i32_0 = arith.constant 0 : i32
    %c0_i32_1 = arith.constant 0 : i32
    return %c0_i32, %c0_i32_0 : i32, i32
  }
  func.func @transform_7(%arg0: i32) -> (i32, i32) {
    %c0_i32 = arith.constant 0 : i32
    %c0_i32_0 = arith.constant 0 : i32
    %c0_i32_1 = arith.constant 0 : i32
    return %c0_i32, %c0_i32_0 : i32, i32
  }
  func.func @transform_8(%arg0: i32) -> (i32, i32) {
    %c0_i32 = arith.constant 0 : i32
    %c0_i32_0 = arith.constant 0 : i32
    %c0_i32_1 = arith.constant 0 : i32
    return %c0_i32, %c0_i32_0 : i32, i32
  }
  func.func @transform_9(%arg0: i32) -> (i32, i32) {
    %c0_i32 = arith.constant 0 : i32
    %c0_i32_0 = arith.constant 0 : i32
    return %arg0, %c0_i32 : i32, i32
  }
}

</mosaic_0001>

<bundles_post_ra>
// kernel: tpu_custom_call.1
= control target key start
LH: loop header
LB: loop body
LE: loop exit
PB: predicated region body
PF: predicated region fallthrough
CT: control target
= control target key end

     0   :  { %14 = vsyncpa [#allocation3], 0  ;;  %s345_s0 = inlined_call_operand.hbm [shape: f32[8,16], index: 0, kind: input, shape index: {}]   ;;  %s346_s1 = inlined_call_operand.hbm [shape: f32[16,32], index: 1, kind: input, shape index: {}]   ;;  %s347_s2 = inlined_call_operand.vmem [shape: f32[1,32], index: 2, kind: input, shape index: {}]   ;;  %s348_s3 = inlined_call_operand.vmem [shape: f32[32,32], index: 3, kind: input, shape index: {}]   ;;  %s349_s4 = inlined_call_operand.vmem [shape: f32[1,32], index: 4, kind: input, shape index: {}]   ;;  %s350_s5 = inlined_call_operand.vmem [shape: f32[32,4], index: 5, kind: input, shape index: {}]   ;;  %s351_s6 = inlined_call_operand.vmem [shape: f32[1,4], index: 6, kind: input, shape index: {}]   ;;  %s352_s7 = inlined_call_operand.vmem [shape: f32[1,4], index: 7, kind: input, shape index: {}]   ;;  %s353_s8 = inlined_call_operand.vmem [shape: f32[1,4], index: 8, kind: input, shape index: {}]   ;;  %s354_s9 = inlined_call_operand.vmem [shape: f32[8,4], index: 9, kind: output, shape index: {}]  }
   0x1   :  { %s21_s11 = sshll.u32 %s345_s0, 4  ;;  %s22_s11 = int_to_ptr.hbm [resolvable:$true] %s21_s11 }
   0x2   :  { %15 = vsyncpa [#allocation5], 0  ;;  %s243_s12 = smov [#allocation2]   ;;  %s31_s16 = sshll.u32 %s346_s1, 4  ;;  %s32_s16 = int_to_ptr.hbm [resolvable:$true] %s31_s16 }
   0x3   :  { %s23_s13 = sshll.u32 %s243_s12, 4  ;;  %s244_s17 = smov [#allocation4]   ;;  %s24_s13 = int_to_ptr.vmem [resolvable:$true] %s23_s13 }
   0x4   :  { %26 = dma.hbm_to_vmem [thread:$0]  %s22_s11, 128, %s24_s13, [#allocation3]  }
   0x5   :  { %s33_s18 = sshll.u32 %s244_s17, 4  ;;  %s245_s19 = smov 128   ;;  %s34_s18 = int_to_ptr.vmem [resolvable:$true] %s33_s18 }
   0x6   :  { %s246_s20 = smov 8  }
   0x7   :  { %39 = dma.hbm_to_vmem [thread:$0]  %s32_s16, 256, %s34_s18, [#allocation5], %s245_s19, %s245_s19, %s246_s20  }
   0x8   :  { %239 = dma.done.wait [#allocation3], 128  }
   0x9   :  { %240 = vsyncadd [#allocation3], 4294967168 }
   0xa   :  { %241 = dma.done.wait [#allocation5], 256  }
   0xb   :  { %242 = vsyncadd [#allocation5], 4294967040  ;;  %v64_v0 = vld [vmem:[#allocation4 + $0x8] sm:$0xff]  ;;  %v63_v1 = vld [vmem:[#allocation4] sm:$0xff]  ;;  %vm69_vm0 = vcmask 130048   ;;  %vm102_vm1 = vcmask 261120  }
   0xc   :  { %87 = vmatpush.msra.mxu0 %v64_v0  ;;  %v62_v2 = vld [vmem:[#allocation2] sm:$0xff]  ;;  %v97_v3 = vld [vmem:[%s348_s3 + $0x18] sm:$0xff]  ;;  %v96_v4 = vld [vmem:[%s348_s3 + $0x10] sm:$0xff]  ;;  %vm169_vm2 = vcmask 31744  }
   0xd   :  { %118 = vmatpush.msra.mxu1 %v97_v3  ;;  %v95_v5 = vld [vmem:[%s348_s3 + $0x8] sm:$0xff]  ;;  %v94_v6 = vld [vmem:[%s348_s3] sm:$0xff]  ;;  %v130_v7 = vld [vmem:[%s350_s5 + $0x18] sm:$0xff] }
   0xe   :  { %88 = vmatpush.msra.mxu0 %v63_v1  ;;  %150 = vmatpush.msra.mxu2 %v130_v7  ;;  %v184_v8 = vld [vmem:[%s347_s2] ss:$0 sm:$0xff]  ;;  %v129_v12 = vld [vmem:[%s350_s5 + $0x10] sm:$0xff]  ;;  %v128_v13 = vld [vmem:[%s350_s5 + $0x8] sm:$0xff] }
   0xf   :  { %177 = vmatmul.msk.f32.vlgmr.msra.gmra.mxu0 %vm69_vm0, %v62_v2  ;;  %119 = vmatpush.msra.mxu1 %v96_v4  ;;  %v127_v14 = vld [vmem:[%s350_s5] sm:$0xff] }
  0x10   :  { %151 = vmatpush.msra.mxu2 %v129_v12  ;;  %v185_v15 = vld [vmem:[%s349_s4] ss:$0 sm:$0xff] }
  0x11   :  { %120 = vmatpush.msra.mxu1 %v95_v5  ;;  %v186_v19 = vld [vmem:[%s351_s6] ss:$0 sm:$0xff] }
  0x12   :  { %152 = vmatpush.msra.mxu2 %v128_v13  ;;  %v187_v22 = vld [vmem:[%s352_s7] ss:$0 sm:$0xff] }
  0x13   :  { %121 = vmatpush.msra.mxu1 %v94_v6  ;;  %v188_v23 = vld [vmem:[%s353_s8] ss:$0 sm:$0xff] }
  0x14   :  { %153 = vmatpush.msra.mxu2 %v127_v14 }
  0x8c   :  { %v90_v9 = vpop.f32.mrf.mxu0 }
  0x8d   :  { %v91_v10 = vadd.f32 %v184_v8, %v90_v9 }
  0x8f   :  { %v93_v11 = vmax.f32 %v91_v10, 0.0 }
  0x91   :  { %178 = vmatmul.msk.f32.vlgmr.msra.gmra.mxu1 %vm102_vm1, %v93_v11 }
 0x10e   :  { %v123_v16 = vpop.f32.mrf.mxu1 }
 0x10f   :  { %v124_v17 = vadd.f32 %v185_v15, %v123_v16 }
 0x111   :  { %v126_v18 = vmax.f32 %v124_v17, 0.0 }
 0x113   :  { %179 = vmatmul.msk.f32.vlgmr.msra.gmra.mxu2 %vm102_vm1, %v126_v18 }
 0x196   :  { %v155_v20 = vpop.f32.mrf.mxu2 }
 0x197   :  { %v156_v21 = vadd.f32 %v186_v19, %v155_v20 }
 0x199   :  { %189 = vtanh.f32 %v156_v21 }
 0x19f   :  { %v190_v24 = vpop.eup %189 }
 0x1a0   :  { %v163_v25 = vmul.f32 %v190_v24, %v187_v22 }
 0x1a2   :  { %v168_v26 = vadd.f32 %v188_v23, %v163_v25 }
 0x1a4   :  { %170 = vst.msk [vmem:[%s354_s9] sm:$0xff] %vm169_vm2, %v168_v26 }
 0x1a5   :  { %175 = vsyncpa [#allocation3], 1 }
 0x1a6   :  { %176 = vsyncpa [#allocation5], 1 }

</bundles_post_ra>
